<compile_context>
chip_gen: v5e
topology: v5e:2x2
jax: 0.10.0
libtpu: 0.0.40
codegen_flags: <defaults>
</compile_context>

<pallas_src>
import functools

import jax
import jax.numpy as jnp
from jax.experimental import pallas as pl
from jax.experimental.pallas import tpu as pltpu

_LANES = 128
_ACC_SUBLANES = 32          # per-split accumulator: (32, 128) f32
_PAD_LOGIT = -1e9           # pad logit: bce==0 exactly -> focal contribution 0


def _round_up(x, m):
    return ((x + m - 1) // m) * m


def _default_tile_rows():
    # 8192 rows (4 MiB / f32 tile) amortizes the ~0.35 us per-step overhead on
    # v6e/v7x HBM; 4096 is already ~94% step-efficient on v5e.
    try:
        kind = jax.devices()[0].device_kind.lower()
    except Exception:
        return 4096
    if "v6" in kind or "v7" in kind:
        return 8192
    return 4096


def _focal_loss_kernel(x_ref, t_ref, acc_ref, *, alpha, gamma, binary_targets):
    # Zero the per-split accumulator at the start of its reduction sweep.
    @pl.when(pl.program_id(1) == 0)
    def _():
        acc_ref[...] = jnp.zeros_like(acc_ref)

    x = x_ref[...].astype(jnp.float32)
    t = t_ref[...].astype(jnp.float32)

    ax = jnp.abs(x)
    e1 = jnp.exp(-ax)             # EUP
    log_term = jnp.log1p(e1)      # EUP

    if binary_targets:
        # Exact for hard {0,1} targets; replaces the second exp(-bce) with a
        # cheap approximate reciprocal (2 transcendentals/element instead of 3).
        disagree = jnp.logical_xor(x > 0.0, t > 0.5)
        bce = jnp.where(disagree, ax, 0.0) + log_term
        pt = jnp.where(disagree, e1, 1.0) * pl.reciprocal(1.0 + e1, approx=True)
        u = jnp.maximum(1.0 - pt, 0.0)   # guard tiny negatives from approx recip
    else:
        # Stable BCE-with-logits; matches PyTorch for arbitrary (soft) targets.
        bce = jnp.maximum(x, 0.0) - x * t + log_term
        pt = jnp.exp(-bce)        # EUP
        u = 1.0 - pt

    # gamma is a static Python float; avoid float-exponent pow for common cases.
    if gamma == 2.0:
        w = u * u
    elif gamma == 1.0:
        w = u
    elif gamma == 0.0:
        w = jnp.ones_like(u)
    else:
        w = u ** gamma

    focal = alpha * (w * bce)

    # Per-lane partial sums into a (32, 128) accumulator: 4 independent vreg
    # add chains, plain VPU work (no XLU tree).  tile_rows % 32 == 0 always.
    acc_ref[...] += focal.reshape(-1, _ACC_SUBLANES, _LANES).sum(axis=0)


def _run_pallas(x2d, t2d, *, splits, inner, tr, alpha, gamma,
                binary_targets, core_parallel):
    kernel = functools.partial(
        _focal_loss_kernel, alpha=float(alpha), gamma=float(gamma),
        binary_targets=bool(binary_targets))

    in_spec = pl.BlockSpec((tr, _LANES), lambda s, i: (s * inner + i, 0))
    split_sem = (pltpu.CORE_PARALLEL if (core_parallel and splits > 1)
                 else "parallel")

    # 2 inputs x 2 pipeline buffers, plus headroom for elementwise temporaries;
    # capped at 48 MiB so it stays inside v7x's 64 MiB/TC VMEM.
    itemsize = max(jnp.dtype(x2d.dtype).itemsize, jnp.dtype(t2d.dtype).itemsize)
    buf_bytes = 2 * 2 * tr * _LANES * itemsize
    vmem_limit = int(min(48 << 20, max(32 << 20, 3 * buf_bytes)))

    partials = pl.pallas_call(
        kernel,
        out_shape=jax.ShapeDtypeStruct((splits * _ACC_SUBLANES, _LANES),
                                       jnp.float32),
        grid=(splits, inner),
        in_specs=[in_spec, in_spec],
        out_specs=pl.BlockSpec((_ACC_SUBLANES, _LANES), lambda s, i: (s, 0)),
        compiler_params=pltpu.CompilerParams(
            dimension_semantics=(split_sem, "arbitrary"),
            vmem_limit_bytes=vmem_limit),
    )(x2d, t2d)
    return jnp.sum(partials)


def _focal_sum_jnp(x, t, alpha, gamma):
    """Fused jnp fallback for the small tail (XLA fuses slice+math+reduce)."""
    x = x.astype(jnp.float32)
    t = t.astype(jnp.float32)
    bce = jnp.maximum(x, 0.0) - x * t + jnp.log1p(jnp.exp(-jnp.abs(x)))
    pt = jnp.exp(-bce)
    return jnp.sum(alpha * (1.0 - pt) ** gamma * bce)


def focal_loss(inputs, targets, alpha=0.25, gamma=2.0, *,
               tile_rows=None, num_splits=1,
               binary_targets=False, core_parallel=False):
    """Mean focal loss over all elements (matches the PyTorch FocalLoss module).

    For v7x, pass num_splits=2, core_parallel=True so both TensorCores stream
    HBM.  binary_targets=True is an exact fast path for hard {0,1} targets only.
    """
    assert inputs.shape == targets.shape, "inputs/targets shape mismatch"
    n = int(inputs.size)
    if n == 0:
        return jnp.float32(float("nan"))

    if tile_rows is None:
        tile_rows = _default_tile_rows()

    run = functools.partial(_run_pallas, alpha=alpha, gamma=gamma,
                            binary_targets=binary_targets,
                            core_parallel=core_parallel)

    xf = inputs.reshape(-1)
    tf = targets.reshape(-1)

    splits = max(1, int(num_splits))
    tr = max(_ACC_SUBLANES, _round_up(int(tile_rows), _ACC_SUBLANES))

    if n % _LANES == 0:
        rows = n // _LANES
        x2d = xf.reshape(rows, _LANES)          # contiguous reshape: free
        t2d = tf.reshape(rows, _LANES)
        inner = rows // (splits * tr)
        if inner >= 1:
            # Hot path: the grid covers only the exactly-tiling prefix of the
            # full (rows, 128) view -- no padding, no copies, no in-kernel mask.
            prefix_rows = splits * inner * tr
            total = run(x2d, t2d, splits=splits, inner=inner, tr=tr)
            if prefix_rows < rows:
                total = total + _focal_sum_jnp(x2d[prefix_rows:],
                                               t2d[prefix_rows:], alpha, gamma)
        else:
            # Small input: single tile; pad a handful of rows with values whose
            # focal contribution is exactly zero (logit=-1e9, target=0).
            tr_s = max(_ACC_SUBLANES, _round_up(rows, _ACC_SUBLANES))
            pad_rows = tr_s - rows
            if pad_rows:
                x2d = jnp.pad(x2d, ((0, pad_rows), (0, 0)),
                              constant_values=_PAD_LOGIT)
                t2d = jnp.pad(t2d, ((0, pad_rows), (0, 0)), constant_values=0)
            total = run(x2d, t2d, splits=1, inner=1, tr=tr_s)
    else:
        # Element count not a multiple of 128: pad the flat arrays up to the
        # tile grid with zero-contribution values (no in-kernel mask needed).
        # TODO(synk): a 1-D-block kernel would avoid this copy for very large
        # inputs whose size is not a multiple of 128.
        rows = -(-n // _LANES)
        if rows < splits * tr:
            splits = 1
            tr = max(_ACC_SUBLANES, _round_up(rows, _ACC_SUBLANES))
        inner = max(1, -(-rows // (splits * tr)))
        padded_rows = splits * inner * tr
        pad = padded_rows * _LANES - n
        xp = jnp.pad(xf, (0, pad), constant_values=_PAD_LOGIT)
        tp = jnp.pad(tf, (0, pad), constant_values=0)
        total = run(xp.reshape(padded_rows, _LANES),
                    tp.reshape(padded_rows, _LANES),
                    splits=splits, inner=inner, tr=tr)

    return total / jnp.float32(n)


def focal_loss_ref(inputs, targets, alpha=0.25, gamma=2.0):
    x = inputs.astype(jnp.float32)
    t = targets.astype(jnp.float32)
    bce = jnp.maximum(x, 0.0) - x * t + jnp.log1p(jnp.exp(-jnp.abs(x)))
    pt = jnp.exp(-bce)
    return jnp.mean(alpha * (1.0 - pt) ** gamma * bce)


if __name__ == "__main__":
    key = jax.random.PRNGKey(0)
    k1, k2, k3, k4, k5, k6 = jax.random.split(key, 6)

    # Test 1: NCHW logits / binary targets, 2048 elements (single-tile path).
    shape = (2, 4, 16, 16)
    logits = jax.random.normal(k1, shape, dtype=jnp.float32)
    targets = jax.random.bernoulli(k2, p=0.5, shape=shape).astype(jnp.float32)
    loss = jax.block_until_ready(focal_loss(logits, targets))
    ref = focal_loss_ref(logits, targets)
    assert jnp.allclose(loss, ref, rtol=1e-5, atol=1e-6), (loss, ref)

    # Test 2: ragged element count (not a multiple of 128) -> padded path.
    shape2 = (3, 5, 7, 11)
    logits2 = jax.random.normal(k3, shape2, dtype=jnp.float32)
    targets2 = jax.random.bernoulli(k4, p=0.3, shape=shape2).astype(jnp.float32)
    loss2 = jax.block_until_ready(focal_loss(logits2, targets2))
    ref2 = focal_loss_ref(logits2, targets2)
    assert jnp.allclose(loss2, ref2, rtol=1e-5, atol=1e-6), (loss2, ref2)

    # Test 3: copy-free prefix grid + jnp tail + 2-way split accumulation.
    shape3 = (2, 4, 32, 36)                       # 9216 elements = 72 lane-rows
    logits3 = jax.random.normal(k5, shape3, dtype=jnp.float32)
    targets3 = jax.random.bernoulli(k6, p=0.4, shape=shape3).astype(jnp.float32)
    loss3 = jax.block_until_ready(
        focal_loss(logits3, targets3, tile_rows=32, num_splits=2))
    ref3 = focal_loss_ref(logits3, targets3)
    assert jnp.allclose(loss3, ref3, rtol=1e-5, atol=1e-6), (loss3, ref3)

    # Test 4: binary-targets fast path (2 EUP transcendentals / element).
    loss4 = jax.block_until_ready(
        focal_loss(logits, targets, binary_targets=True))
    assert jnp.allclose(loss4, ref, rtol=5e-3, atol=1e-5), (loss4, ref)

    print("KERNEL_OK")
</pallas_src>

<mosaic_0001>
module attributes {stable_mosaic.version = 11 : i64} {
  func.func @_focal_loss_kernel(%arg0: i32, %arg1: i32, %arg2: memref<32x128xf32, #tpu.memory_space<vmem>>, %arg3: memref<32x128xf32, #tpu.memory_space<vmem>>, %arg4: memref<32x128xf32, #tpu.memory_space<vmem>>) attributes {dimension_semantics = [#tpu.dimension_semantics<parallel>, #tpu.dimension_semantics<arbitrary>], iteration_bounds = array<i64: 1, 1>, scalar_prefetch = 0 : i64, scratch_operands = 0 : i64, tpu.core_type = #tpu.core_type<tc>, window_params = [{transform_indices = @transform_0, window_bounds = array<i64: 32, 128>}, {transform_indices = @transform_1, window_bounds = array<i64: 32, 128>}, {transform_indices = @transform_2, window_bounds = array<i64: 32, 128>}]} {
    %c0_i32 = arith.constant 0 : i32
    %0 = arith.cmpi eq, %arg1, %c0_i32 : i32
    %1 = arith.extui %0 : i1 to i32
    %c0_i32_0 = arith.constant 0 : i32
    %2 = arith.cmpi ne, %1, %c0_i32_0 : i32
    scf.if %2 {
      %cst_13 = arith.constant 0.000000e+00 : f32
      %29 = vector.broadcast %cst_13 : f32 to vector<32x128xf32>
      %c0_14 = arith.constant 0 : index
      %c0_15 = arith.constant 0 : index
      %30 = vector.load %arg4[%c0_14, %c0_15] : memref<32x128xf32, #tpu.memory_space<vmem>>, vector<32x128xf32>
      tpu.vector_store %arg4[%c0_14, %c0_15], %29 {strides = array<i32>} : memref<32x128xf32, #tpu.memory_space<vmem>>, vector<32x128xf32>,
    } else {
    }
    %c0 = arith.constant 0 : index
    %c0_1 = arith.constant 0 : index
    %3 = vector.load %arg2[%c0, %c0_1] : memref<32x128xf32, #tpu.memory_space<vmem>>, vector<32x128xf32>
    %c0_2 = arith.constant 0 : index
    %c0_3 = arith.constant 0 : index
    %4 = vector.load %arg3[%c0_2, %c0_3] : memref<32x128xf32, #tpu.memory_space<vmem>>, vector<32x128xf32>
    %5 = math.absf %3 : vector<32x128xf32>
    %cst = arith.constant 0.000000e+00 : f32
    %6 = vector.broadcast %cst : f32 to vector<32x128xf32>
    %7 = arith.subf %6, %5 : vector<32x128xf32>
    %8 = math.exp %7 : vector<32x128xf32>
    %9 = math.log1p %8 : vector<32x128xf32>
    %cst_4 = arith.constant 0.000000e+00 : f32
    %10 = vector.broadcast %cst_4 : f32 to vector<32x128xf32>
    %11 = arith.maximumf %3, %10 : vector<32x128xf32>
    %12 = arith.mulf %3, %4 : vector<32x128xf32>
    %13 = arith.subf %11, %12 : vector<32x128xf32>
    %14 = arith.addf %13, %9 : vector<32x128xf32>
    %cst_5 = arith.constant 0.000000e+00 : f32
    %15 = vector.broadcast %cst_5 : f32 to vector<32x128xf32>
    %16 = arith.subf %15, %14 : vector<32x128xf32>
    %17 = math.exp %16 : vector<32x128xf32>
    %cst_6 = arith.constant 1.000000e+00 : f32
    %18 = vector.broadcast %cst_6 : f32 to vector<32x128xf32>
    %19 = arith.subf %18, %17 : vector<32x128xf32>
    %20 = arith.mulf %19, %19 : vector<32x128xf32>
    %21 = arith.mulf %20, %14 : vector<32x128xf32>
    %cst_7 = arith.constant 2.500000e-01 : f32
    %22 = vector.broadcast %cst_7 : f32 to vector<32x128xf32>
    %23 = arith.mulf %22, %21 : vector<32x128xf32>
    %c0_8 = arith.constant 0 : index
    %c0_9 = arith.constant 0 : index
    %24 = vector.load %arg4[%c0_8, %c0_9] : memref<32x128xf32, #tpu.memory_space<vmem>>, vector<32x128xf32>
    %25 = vector.shape_cast %23 : vector<32x128xf32> to vector<1x32x128xf32>
    %cst_10 = arith.constant dense<0.000000e+00> : vector<32x128xf32>
    %26 = vector.multi_reduction <add>, %25, %cst_10 [0] : vector<1x32x128xf32> to vector<32x128xf32>
    %27 = arith.addf %24, %26 : vector<32x128xf32>
    %c0_11 = arith.constant 0 : index
    %c0_12 = arith.constant 0 : index
    %28 = vector.load %arg4[%c0_11, %c0_12] : memref<32x128xf32, #tpu.memory_space<vmem>>, vector<32x128xf32>
    tpu.vector_store %arg4[%c0_11, %c0_12], %27 {strides = array<i32>} : memref<32x128xf32, #tpu.memory_space<vmem>>, vector<32x128xf32>,
    return
  }
  func.func @transform_0(%arg0: i32, %arg1: i32) -> (i32, i32) {
    %c1_i32 = arith.constant 1 : i32
    %0 = arith.muli %arg0, %c1_i32 : i32
    %1 = arith.addi %0, %arg1 : i32
    %c0_i32 = arith.constant 0 : i32
    %c0_i32_0 = arith.constant 0 : i32
    return %1, %c0_i32 : i32, i32
  }
  func.func @transform_1(%arg0: i32, %arg1: i32) -> (i32, i32) {
    %c1_i32 = arith.constant 1 : i32
    %0 = arith.muli %arg0, %c1_i32 : i32
    %1 = arith.addi %0, %arg1 : i32
    %c0_i32 = arith.constant 0 : i32
    %c0_i32_0 = arith.constant 0 : i32
    return %1, %c0_i32 : i32, i32
  }
  func.func @transform_2(%arg0: i32, %arg1: i32) -> (i32, i32) {
    %c0_i32 = arith.constant 0 : i32
    %c0_i32_0 = arith.constant 0 : i32
    return %arg0, %c0_i32 : i32, i32
  }
}

</mosaic_0001>

<bundles_post_ra>
// kernel: tpu_custom_call.1
= control target key start
LH: loop header
LB: loop body
LE: loop exit
PB: predicated region body
PF: predicated region fallthrough
CT: control target
= control target key end

     0   :  { %7 = vsyncpa [#allocation3], 0  ;;  %s371_s0 = inlined_call_operand.hbm [shape: f32[32,128], index: 0, kind: input, shape index: {}]   ;;  %s372_s1 = inlined_call_operand.hbm [shape: f32[32,128], index: 1, kind: input, shape index: {}]   ;;  %s373_s2 = inlined_call_operand.hbm [shape: f32[32,128], index: 2, kind: output, shape index: {}]  }
   0x1   :  { %8 = vsyncpa [#allocation6], 0 }
   0x2   :  { %9 = vsyncpa [#allocation4], 0  ;;  %s18_s11 = sshll.u32 %s371_s0, 4  ;;  %s312_s12 = smov [#allocation2]   ;;  %s19_s11 = int_to_ptr.hbm [resolvable:$true] %s18_s11 }
   0x3   :  { %s20_s13 = sshll.u32 %s312_s12, 4  ;;  %s35_s16 = sshll.u32 %s372_s1, 4  ;;  %s21_s13 = int_to_ptr.vmem [resolvable:$true] %s20_s13  ;;  %s36_s16 = int_to_ptr.hbm [resolvable:$true] %s35_s16 }
   0x4   :  { %s313_s17 = smov 128   ;;  %s314_s18 = smov 8  }
   0x5   :  { %26 = dma.hbm_to_vmem [thread:$0]  %s19_s11, 512, %s21_s13, [#allocation3], %s313_s17, %s313_s17, %s314_s18  }
   0x6   :  { %s315_s19 = smov [#allocation5]  }
   0x7   :  { %s37_s20 = sshll.u32 %s315_s19, 4  ;;  %s38_s20 = int_to_ptr.vmem [resolvable:$true] %s37_s20 }
   0x8   :  { %43 = dma.hbm_to_vmem [thread:$0]  %s36_s16, 512, %s38_s20, [#allocation6], %s313_s17, %s313_s17, %s314_s18  }
   0x9   :  { %306 = dma.done.wait [#allocation3], 512  }
   0xa   :  { %307 = vsyncadd [#allocation3], 4294966784 }
   0xb   :  { %308 = dma.done.wait [#allocation6], 512  }
   0xc   :  { %309 = vsyncadd [#allocation6], 4294966784  ;;  %v64_v0 = vld [vmem:[#allocation2] sm:$0xff]  ;;  %v344_v1 = vld [vmem:[#allocation2 + $0x8] sm:$0xff]  ;;  %s316_s0 = smov [#allocation7]   ;;  %s190_s23 = sshll.u32 %s373_s2, 4  ;;  %s191_s23 = int_to_ptr.hbm [resolvable:$true] %s190_s23 }
   0xd   :  { %v72_v2 = vand.u32 2147483647, %v64_v0  ;;  %v73_v3 = vand.u32 2147483647, %v344_v1  ;;  %v347_v4 = vld [vmem:[#allocation2 + $0x10] sm:$0xff]  ;;  %v349_v5 = vld [vmem:[#allocation2 + $0x18] sm:$0xff] }
   0xe   :  { %v74_v8 = vand.u32 2147483647, %v347_v4  ;;  %v75_v9 = vand.u32 2147483647, %v349_v5  ;;  %v68_v17 = vld [vmem:[#allocation5] sm:$0xff]  ;;  %v124_v25 = vmax.f32 %v64_v0, 0.0 }
   0xf   :  { %v76_v6 = vsub.f32 0.0, %v72_v2  ;;  %v77_v7 = vsub.f32 0.0, %v73_v3  ;;  %v128_v26 = vmul.f32 %v68_v17, %v64_v0  ;;  %v69_v27 = vld [vmem:[#allocation5 + $0x8] sm:$0xff]  ;;  %v125_v30 = vmax.f32 %v344_v1, 0.0  ;;  %v70_v31 = vld [vmem:[#allocation5 + $0x10] sm:$0xff]  ;;  %v71_v39 = vld [vmem:[#allocation5 + $0x18] sm:$0xff] }
  0x10   :  { %v78_v12 = vsub.f32 0.0, %v74_v8  ;;  %v79_v13 = vsub.f32 0.0, %v75_v9  ;;  %v129_v37 = vmul.f32 %v69_v27, %v344_v1  ;;  %v126_v42 = vmax.f32 %v347_v4, 0.0  ;;  %s188_s1 = sshll.u32 %s316_s0, 4  ;;  %s189_s1 = int_to_ptr.vmem [resolvable:$true] %s188_s1 }
  0x11   :  { %v80_v10 = vmul.f32 1.442695, %v76_v6  ;;  %v82_v11 = vmul.f32 1.442695, %v77_v7  ;;  %v130_v43 = vmul.f32 %v70_v31, %v347_v4  ;;  %v132_v45 = vsub.f32 %v124_v25, %v128_v26 }
  0x12   :  { %v84_v14 = vmul.f32 1.442695, %v78_v12  ;;  %v86_v15 = vmul.f32 1.442695, %v79_v13  ;;  %v127_v47 = vmax.f32 %v349_v5, 0.0  ;;  %v131_v52 = vmul.f32 %v71_v39, %v349_v5 }
  0x13   :  { %210 = vpow2.f32 %v80_v10  ;;  %v133_v55 = vsub.f32 %v125_v30, %v129_v37  ;;  %v134_v59 = vsub.f32 %v126_v42, %v130_v43 }
  0x14   :  { %212 = vpow2.f32 %v82_v11  ;;  %v135_v2 = vsub.f32 %v127_v47, %v131_v52 }
  0x15   :  { %214 = vpow2.f32 %v84_v14 }
  0x16   :  { %216 = vpow2.f32 %v86_v15 }
  0x19   :  { %v211_v16 = vpop.eup %210 }
  0x1a   :  { %v213_v18 = vpop.eup %212  ;;  %v88_v19 = vadd.f32 1.0, %v211_v16  ;;  %v91_v20 = vmul.f32 -0.5, %v211_v16  ;;  %v94_v33 = vand.u32 2147483647, %v211_v16 }
  0x1b   :  { %v215_v21 = vpop.eup %214  ;;  %v97_v22 = vadd.f32 1.0, %v213_v18  ;;  %v100_v23 = vmul.f32 -0.5, %v213_v18  ;;  %v103_v36 = vand.u32 2147483647, %v213_v18 }
  0x1c   :  { %v217_v24 = vpop.eup %216  ;;  %218 = vlog2.f32 %v88_v19  ;;  %v106_v28 = vadd.f32 1.0, %v215_v21  ;;  %v92_v29 = vadd.f32 1.0, %v91_v20  ;;  %v109_v32 = vmul.f32 -0.5, %v215_v21 }
  0x1d   :  { %220 = vlog2.f32 %v97_v22  ;;  %v101_v34 = vadd.f32 1.0, %v100_v23  ;;  %v115_v35 = vadd.f32 1.0, %v217_v24  ;;  %v118_v40 = vmul.f32 -0.5, %v217_v24 }
  0x1e   :  { %222 = vlog2.f32 %v106_v28  ;;  %v110_v38 = vadd.f32 1.0, %v109_v32  ;;  %v112_v41 = vand.u32 2147483647, %v215_v21  ;;  %v93_v44 = vmul.f32 %v211_v16, %v92_v29 }
  0x1f   :  { %224 = vlog2.f32 %v115_v35  ;;  %v119_v46 = vadd.f32 1.0, %v118_v40  ;;  %vm358_vm0 = vcmp.lt.f32.partialorder %v94_v33, 0.0004427343  ;;  %v102_v50 = vmul.f32 %v213_v18, %v101_v34 }
  0x20   :  { %v121_v51 = vand.u32 2147483647, %v217_v24  ;;  %vm104_vm1 = vcmp.lt.f32.partialorder %v103_v36, 0.0004427343  ;;  %v111_v56 = vmul.f32 %v215_v21, %v110_v38  ;;  %vm113_vm2 = vcmp.lt.f32.partialorder %v112_v41, 0.0004427343 }
  0x21   :  { %v120_v62 = vmul.f32 %v217_v24, %v119_v46 }
  0x22   :  { %v219_v48 = vpop.eup %218  ;;  %vm122_vm3 = vcmp.lt.f32.partialorder %v121_v51, 0.0004427343 }
  0x23   :  { %v221_v53 = vpop.eup %220  ;;  %v90_v54 = vmul.f32 0.6931472, %v219_v48 }
  0x24   :  { %v223_v57 = vpop.eup %222  ;;  %v99_v58 = vmul.f32 0.6931472, %v221_v53 }
  0x25   :  { %v96_v60 = vsel %vm358_vm0, %v93_v44, %v90_v54  ;;  %v108_v61 = vmul.f32 0.6931472, %v223_v57  ;;  %v225_v63 = vpop.eup %224 }
  0x26   :  { %v136_v0 = vadd.f32 %v132_v45, %v96_v60  ;;  %v105_v1 = vsel %vm104_vm1, %v102_v50, %v99_v58  ;;  %v117_v5 = vmul.f32 0.6931472, %v225_v63 }
  0x27   :  { %v137_v3 = vadd.f32 %v133_v55, %v105_v1  ;;  %v114_v4 = vsel %vm113_vm2, %v111_v56, %v108_v61 }
  0x28   :  { %v140_v6 = vsub.f32 0.0, %v136_v0  ;;  %v138_v7 = vadd.f32 %v134_v59, %v114_v4  ;;  %v123_v9 = vsel %vm122_vm3, %v120_v62, %v117_v5 }
  0x29   :  { %v141_v8 = vsub.f32 0.0, %v137_v3  ;;  %v139_v12 = vadd.f32 %v135_v2, %v123_v9 }
  0x2a   :  { %v144_v10 = vmul.f32 1.442695, %v140_v6  ;;  %v142_v11 = vsub.f32 0.0, %v138_v7 }
  0x2b   :  { %v146_v13 = vmul.f32 1.442695, %v141_v8  ;;  %v143_v15 = vsub.f32 0.0, %v139_v12 }
  0x2c   :  { %226 = vpow2.f32 %v144_v10  ;;  %v148_v14 = vmul.f32 1.442695, %v142_v11 }
  0x2d   :  { %228 = vpow2.f32 %v146_v13  ;;  %v150_v16 = vmul.f32 1.442695, %v143_v15 }
  0x2e   :  { %230 = vpow2.f32 %v148_v14 }
  0x2f   :  { %232 = vpow2.f32 %v150_v16 }
  0x32   :  { %v227_v17 = vpop.eup %226 }
  0x33   :  { %v229_v18 = vpop.eup %228  ;;  %v152_v19 = vsub.f32 1.0, %v227_v17 }
  0x34   :  { %v231_v20 = vpop.eup %230  ;;  %v153_v21 = vsub.f32 1.0, %v229_v18 }
  0x35   :  { %v156_v22 = vmul.f32 %v152_v19, %v152_v19  ;;  %v154_v23 = vsub.f32 1.0, %v231_v20  ;;  %v233_v24 = vpop.eup %232 }
  0x36   :  { %v157_v25 = vmul.f32 %v153_v21, %v153_v21  ;;  %v155_v28 = vsub.f32 1.0, %v233_v24 }
  0x37   :  { %v160_v26 = vmul.f32 %v156_v22, %v136_v0  ;;  %v158_v27 = vmul.f32 %v154_v23, %v154_v23 }
  0x38   :  { %v161_v29 = vmul.f32 %v157_v25, %v137_v3  ;;  %v159_v32 = vmul.f32 %v155_v28, %v155_v28 }
  0x39   :  { %v164_v30 = vmul.f32 0.25, %v160_v26  ;;  %v162_v31 = vmul.f32 %v158_v27, %v138_v7 }
  0x3a   :  { %v165_v33 = vmul.f32 0.25, %v161_v29  ;;  %v163_v35 = vmul.f32 %v159_v32, %v139_v12 }
  0x3b   :  { %v166_v34 = vmul.f32 0.25, %v162_v31  ;;  %180 = vst [vmem:[#allocation7] sm:$0xff] %v164_v30 }
  0x3c   :  { %v167_v36 = vmul.f32 0.25, %v163_v35  ;;  %181 = vst [vmem:[#allocation7 + $0x8] sm:$0xff] %v165_v33 }
  0x3d   :  { %182 = vst [vmem:[#allocation7 + $0x10] sm:$0xff] %v166_v34 }
  0x3e   :  { %183 = vst [vmem:[#allocation7 + $0x18] sm:$0xff] %v167_v36 }
  0x3f   :  { %196 = dma.vmem_to_hbm [thread:$0]  %s189_s1, 512, %s191_s23, [#allocation4], %s313_s17, %s313_s17, %s314_s18  }
  0x40   :  { %310 = dma.done.wait [#allocation4], 512  }
  0x41   :  { %311 = vsyncadd [#allocation4], 4294966784 }
  0x42   :  { %201 = vsyncpa [#allocation3], 1 }
  0x43   :  { %202 = vsyncpa [#allocation6], 1 }
  0x44   :  { %203 = vsyncpa [#allocation4], 1 }

</bundles_post_ra>
